<compile_context>
chip_gen: v5e
topology: v5e:2x2
jax: 0.10.0
libtpu: 0.0.40
codegen_flags: <defaults>
</compile_context>

<pallas_src>
import functools
import numpy as np
import jax
import jax.numpy as jnp
from jax.experimental import pallas as pl
from jax.experimental.pallas import tpu as pltpu

NUM_CLASSES = 20
NUM_ANCHORS = 5
LEAKY_SLOPE = 0.1

# ----------------------------------------------------------------------------
# Pallas kernels
# ----------------------------------------------------------------------------

def _mm_fused_kernel(*refs, leaky, apply_scale):
    """K-tiled matmul with f32 accumulator; fused scale/bias (+ LeakyReLU).

    Grid = (M/tm, N/tn, K/tk), K axis last ("arbitrary").  The accumulator
    scratch persists across the K steps; the epilogue (scale/bias/activation)
    runs only on the last K step and writes the output tile once.
    """
    if apply_scale:
        a_ref, b_ref, s_ref, c_ref, o_ref, acc_ref = refs
    else:
        a_ref, b_ref, c_ref, o_ref, acc_ref = refs
        s_ref = None

    k = pl.program_id(2)

    @pl.when(k == 0)
    def _():
        acc_ref[...] = jnp.zeros_like(acc_ref)

    acc_ref[...] += jnp.dot(a_ref[...], b_ref[...],
                            preferred_element_type=jnp.float32)

    @pl.when(k == pl.num_programs(2) - 1)
    def _():
        y = acc_ref[...]
        if apply_scale:
            y = y * s_ref[...] + c_ref[...]
        else:
            y = y + c_ref[...]
        if leaky:
            y = jnp.where(y > 0.0, y, LEAKY_SLOPE * y)
        o_ref[...] = y


def _round_up(x, m):
    return (x + m - 1) // m * m


def _pick_tile(dim, unit, max_units):
    """Pad `dim` up to a multiple of `unit`; pick the largest tile that is a
    multiple of `unit`, <= unit*max_units, and divides the padded size."""
    padded = _round_up(dim, unit)
    q = padded // unit
    d = max(dd for dd in range(1, max_units + 1) if q % dd == 0)
    return d * unit, padded


def matmul_fused(a, b, scale, bias, *, leaky, apply_scale=True):
    """a:(M,K), b:(K,N), scale/bias:(1,N) -> (M,N) f32.

    bf16 MXU inputs, f32 accumulation, K-tiled with a VMEM accumulator.
    M/N/K are zero-padded to tile-aligned sizes and the result is sliced.
    """
    M, K = a.shape
    K2, N = b.shape
    assert K == K2

    tm, Mp = _pick_tile(M, 16, 32)    # tm up to 512, multiple of 16 (bf16 sublanes)
    tn, Np = _pick_tile(N, 128, 4)    # tn up to 512, lane-dense
    tk, Kp = _pick_tile(K, 128, 8)    # tk up to 1024

    a = a.astype(jnp.bfloat16)
    b = b.astype(jnp.bfloat16)
    if (Mp, Kp) != (M, K):
        a = jnp.pad(a, ((0, Mp - M), (0, Kp - K)))
    if (Kp, Np) != (K, N):
        b = jnp.pad(b, ((0, Kp - K), (0, Np - N)))

    bias = bias.astype(jnp.float32)
    if Np != N:
        bias = jnp.pad(bias, ((0, 0), (0, Np - N)))

    inputs = [a, b]
    in_specs = [
        pl.BlockSpec((tm, tk), lambda i, j, k: (i, k)),
        pl.BlockSpec((tk, tn), lambda i, j, k: (k, j)),
    ]
    if apply_scale:
        scale = scale.astype(jnp.float32)
        if Np != N:
            scale = jnp.pad(scale, ((0, 0), (0, Np - N)), constant_values=1.0)
        inputs.append(scale)
        in_specs.append(pl.BlockSpec((1, tn), lambda i, j, k: (0, j)))
    inputs.append(bias)
    in_specs.append(pl.BlockSpec((1, tn), lambda i, j, k: (0, j)))

    grid = (Mp // tm, Np // tn, Kp // tk)
    cost = pl.CostEstimate(
        flops=2 * Mp * Np * Kp,
        transcendentals=0,
        bytes_accessed=Mp * Kp * 2 + Kp * Np * 2 + Mp * Np * 4,
    )

    out = pl.pallas_call(
        functools.partial(_mm_fused_kernel, leaky=leaky, apply_scale=apply_scale),
        out_shape=jax.ShapeDtypeStruct((Mp, Np), jnp.float32),
        grid=grid,
        in_specs=in_specs,
        out_specs=pl.BlockSpec((tm, tn), lambda i, j, k: (i, j)),
        scratch_shapes=[pltpu.VMEM((tm, tn), jnp.float32)],
        compiler_params=pltpu.CompilerParams(
            dimension_semantics=("parallel", "parallel", "arbitrary")),
        cost_estimate=cost,
    )(*inputs)

    if (Mp, Np) != (M, N):
        out = out[:M, :N]
    return out


def _head_kernel(o_ref, delta_ref, conf_ref, cls_ref):
    """YOLO head: sigmoid(xy), exp(hw), sigmoid(conf), softmax(classes)."""
    o = o_ref[...]                                   # (N, 5 + num_classes), f32
    xy = jax.nn.sigmoid(o[:, 0:2])
    hw = jnp.exp(o[:, 2:4])
    conf = jax.nn.sigmoid(o[:, 4:5])
    cs = o[:, 5:]
    cs = cs - jnp.max(cs, axis=-1, keepdims=True)
    e = jnp.exp(cs)
    cls = e / jnp.sum(e, axis=-1, keepdims=True)
    delta_ref[...] = jnp.concatenate([xy, hw], axis=-1)   # single store
    conf_ref[...] = conf
    cls_ref[...] = cls


def yolo_head(out2d):
    n = out2d.shape[0]
    return pl.pallas_call(
        _head_kernel,
        out_shape=(jax.ShapeDtypeStruct((n, 4), jnp.float32),
                   jax.ShapeDtypeStruct((n, 1), jnp.float32),
                   jax.ShapeDtypeStruct((n, NUM_CLASSES), jnp.float32)),
    )(out2d)


# ----------------------------------------------------------------------------
# JAX glue (layout / data movement only)
# ----------------------------------------------------------------------------

def im2col(x, k):
    """x: (B,H,W,C) NHWC (bf16), 'same' padding, stride 1 -> (B*H*W, k*k*C).

    TODO(synk): could be folded into the matmul kernel as a (dy,dx)
    accumulation over shifted blocks to avoid materializing the 9x-expanded
    tensor in HBM; kept as bf16 glue here (halves the traffic vs f32).
    """
    B, H, W, C = x.shape
    if k == 1:
        return x.reshape(B * H * W, C)
    p = (k - 1) // 2
    xp = jnp.pad(x, ((0, 0), (p, p), (p, p), (0, 0)))
    cols = [xp[:, dy:dy + H, dx:dx + W, :] for dy in range(k) for dx in range(k)]
    return jnp.concatenate(cols, axis=-1).reshape(B * H * W, k * k * C)


def maxpool2x2(x):
    """nn.MaxPool2d(kernel_size=2, stride=2) equivalent in NHWC (glue)."""
    B, H, W, C = x.shape
    return jnp.max(x.reshape(B, H // 2, 2, W // 2, 2, C), axis=(2, 4))


def reorg_nhwc(x, stride=2):
    """ReorgLayer: out[b, h', w', (i*stride+j)*C + c] = x[b, s*h'+i, s*w'+j, c]."""
    B, H, W, C = x.shape
    Ho, Wo = H // stride, W // stride
    x = x.reshape(B, Ho, stride, Wo, stride, C)
    x = x.transpose(0, 1, 3, 2, 4, 5)
    return x.reshape(B, Ho, Wo, stride * stride * C)


# ----------------------------------------------------------------------------
# Parameters (deterministic synthetic init; BN folded into scale/bias)
# ----------------------------------------------------------------------------

CONV1_SPECS = [(3, 32, 3), (32, 64, 3),
               (64, 128, 3), (128, 64, 1), (64, 128, 3),
               (128, 256, 3), (256, 128, 1), (128, 256, 3),
               (256, 512, 3), (512, 256, 1), (256, 512, 3),
               (512, 256, 1), (256, 512, 3)]
CONV2_SPECS = [(512, 1024, 3), (1024, 512, 1), (512, 1024, 3),
               (1024, 512, 1), (512, 1024, 3)]
CONV3_SPECS = [(1024, 1024, 3), (1024, 1024, 3)]
DOWNSAMPLER_SPECS = [(512, 64, 1)]
CONV4_SPECS = [(1280, 1024, 3)]


def _init_conv_bn(key, cin, cout, k):
    kw, kg, kb, km, kv = jax.random.split(key, 5)
    fan_in = cin * k * k
    w = jax.random.normal(kw, (k * k * cin, cout), jnp.float32) * np.sqrt(2.0 / fan_in)
    gamma = 1.0 + 0.1 * jax.random.normal(kg, (cout,), jnp.float32)
    beta = 0.1 * jax.random.normal(kb, (cout,), jnp.float32)
    mean = 0.1 * jax.random.normal(km, (cout,), jnp.float32)
    var = 1.0 + 0.1 * jnp.abs(jax.random.normal(kv, (cout,), jnp.float32))
    scale = gamma / jnp.sqrt(var + 1e-5)     # eval-mode BatchNorm folded
    bias = beta - mean * scale
    return {"w": w.astype(jnp.bfloat16),                 # bf16 MXU weights
            "scale": scale.reshape(1, cout).astype(jnp.float32),
            "bias": bias.reshape(1, cout).astype(jnp.float32),
            "k": k}


def build_params(key):
    params = {}
    groups = [("conv1", CONV1_SPECS), ("conv2", CONV2_SPECS),
              ("conv3", CONV3_SPECS), ("downsampler", DOWNSAMPLER_SPECS),
              ("conv4", CONV4_SPECS)]
    for name, specs in groups:
        key, sub = jax.random.split(key)
        keys = jax.random.split(sub, len(specs))
        params[name] = [_init_conv_bn(kk, cin, cout, k)
                        for kk, (cin, cout, k) in zip(keys, specs)]
    # final 1x1 conv (has bias, no BN, no activation)
    out_ch = (5 + NUM_CLASSES) * NUM_ANCHORS   # 125
    key, kw, kb = jax.random.split(key, 3)
    w = jax.random.normal(kw, (1024, out_ch), jnp.float32) * np.sqrt(1.0 / 1024)
    b = 0.01 * jax.random.normal(kb, (1, out_ch), jnp.float32)
    params["final"] = {"w": w.astype(jnp.bfloat16), "bias": b}
    return params


# ----------------------------------------------------------------------------
# Forward pass (inference path: training=False)
# ----------------------------------------------------------------------------

def conv_bn_leaky_apply(x, p):
    B, H, W, _ = x.shape
    cols = im2col(x, p["k"])
    y = matmul_fused(cols, p["w"], p["scale"], p["bias"],
                     leaky=True, apply_scale=True)
    return y.astype(jnp.bfloat16).reshape(B, H, W, -1)


def yolov2_forward(x_nchw, P):
    # NCHW -> NHWC, bf16 activations throughout the backbone
    x = jnp.transpose(x_nchw, (0, 2, 3, 1)).astype(jnp.bfloat16)

    # conv1 = darknet19 layer0..layer4
    c1 = P["conv1"]
    x = conv_bn_leaky_apply(x, c1[0])                      # layer0
    x = maxpool2x2(x); x = conv_bn_leaky_apply(x, c1[1])   # layer1
    x = maxpool2x2(x)
    for i in (2, 3, 4):                                    # layer2
        x = conv_bn_leaky_apply(x, c1[i])
    x = maxpool2x2(x)
    for i in (5, 6, 7):                                    # layer3
        x = conv_bn_leaky_apply(x, c1[i])
    x = maxpool2x2(x)
    for i in (8, 9, 10, 11, 12):                           # layer4
        x = conv_bn_leaky_apply(x, c1[i])
    conv1_out = x                                          # (B, H/16, W/16, 512)

    # shortcut = reorg(downsampler(conv1_out))
    sc = conv_bn_leaky_apply(conv1_out, P["downsampler"][0])
    sc = reorg_nhwc(sc, 2)                                 # (B, H/32, W/32, 256)

    # conv2 = darknet19 layer5
    x = maxpool2x2(conv1_out)
    for p in P["conv2"]:
        x = conv_bn_leaky_apply(x, p)

    # conv3
    for p in P["conv3"]:
        x = conv_bn_leaky_apply(x, p)

    # cat([shortcut, x], dim=channels)
    x = jnp.concatenate([sc, x], axis=-1)                  # 1280 channels

    # conv4: conv_bn_leaky(1280,1024,3) then plain Conv2d(1024,125,1) with bias
    x = conv_bn_leaky_apply(x, P["conv4"][0])
    B, H, W, C = x.shape
    wf, bf = P["final"]["w"], P["final"]["bias"]
    # no BN scale here: acc + bias only (kernel skips the scale multiply/DMA);
    # output channels are padded 125 -> 128 inside matmul_fused (lane-dense).
    out = matmul_fused(x.reshape(B * H * W, C), wf, None, bf,
                       leaky=False, apply_scale=False)
    out = out.reshape(B, H, W, -1)                         # (B, h, w, 125)

    # permute(0,2,3,1).view(B, h*w*A, 5+nc)  == NHWC reshape
    n_box = H * W * NUM_ANCHORS
    o2d = out.reshape(B * n_box, 5 + NUM_CLASSES)
    delta2d, conf2d, cls2d = yolo_head(o2d)
    delta_pred = delta2d.reshape(B, n_box, 4)
    conf_pred = conf2d.reshape(B, n_box, 1)
    class_pred = cls2d.reshape(B, n_box, NUM_CLASSES)
    # TODO(synk): training branch (build_target / yolo_loss) not implemented;
    #             only the inference (training=False) path is reproduced.
    return delta_pred, conf_pred, class_pred


# ----------------------------------------------------------------------------

if __name__ == "__main__":
    root = jax.random.PRNGKey(0)
    k_in, k_par = jax.random.split(root)

    # Small input consistent with the module: NCHW, 3 channels, spatial 64
    x = jax.random.normal(k_in, (2, 3, 64, 64), jnp.float32)
    params = build_params(k_par)

    delta_pred, conf_pred, class_pred = yolov2_forward(x, params)
    jax.block_until_ready((delta_pred, conf_pred, class_pred))

    B, n_box = 2, (64 // 32) * (64 // 32) * NUM_ANCHORS      # 2x2 grid * 5 anchors
    assert delta_pred.shape == (B, n_box, 4)
    assert conf_pred.shape == (B, n_box, 1)
    assert class_pred.shape == (B, n_box, NUM_CLASSES)
    assert bool(jnp.all(jnp.isfinite(delta_pred)))
    assert bool(jnp.allclose(jnp.sum(class_pred, axis=-1), 1.0, atol=1e-4))
    print("KERNEL_OK")
</pallas_src>

<mosaic_0001>
module attributes {stable_mosaic.version = 11 : i64} {
  func.func @_mm_fused_kernel(%arg0: i32, %arg1: i32, %arg2: i32, %arg3: memref<512x128xbf16, #tpu.memory_space<vmem>>, %arg4: memref<128x128xbf16, #tpu.memory_space<vmem>>, %arg5: memref<1x128xf32, #tpu.memory_space<vmem>>, %arg6: memref<1x128xf32, #tpu.memory_space<vmem>>, %arg7: memref<512x128xf32, #tpu.memory_space<vmem>>, %arg8: memref<512x128xf32, #tpu.memory_space<vmem>>) attributes {dimension_semantics = [#tpu.dimension_semantics<parallel>, #tpu.dimension_semantics<parallel>, #tpu.dimension_semantics<arbitrary>], iteration_bounds = array<i64: 16, 1, 1>, scalar_prefetch = 0 : i64, scratch_operands = 1 : i64, tpu.core_type = #tpu.core_type<tc>, window_params = [{transform_indices = @transform_0, window_bounds = array<i64: 512, 128>}, {transform_indices = @transform_1, window_bounds = array<i64: 128, 128>}, {transform_indices = @transform_2, window_bounds = array<i64: 1, 128>}, {transform_indices = @transform_3, window_bounds = array<i64: 1, 128>}, {transform_indices = @transform_4, window_bounds = array<i64: 512, 128>}]} {
    %c0_i32 = arith.constant 0 : i32
    %0 = arith.cmpi eq, %arg2, %c0_i32 : i32
    %1 = arith.extui %0 : i1 to i32
    %c0_i32_0 = arith.constant 0 : i32
    %2 = arith.cmpi ne, %1, %c0_i32_0 : i32
    scf.if %2 {
      %cst_10 = arith.constant 0.000000e+00 : f32
      %12 = vector.broadcast %cst_10 : f32 to vector<512x128xf32>
      %c0_11 = arith.constant 0 : index
      %c0_12 = arith.constant 0 : index
      %13 = vector.load %arg8[%c0_11, %c0_12] : memref<512x128xf32, #tpu.memory_space<vmem>>, vector<512x128xf32>
      tpu.vector_store %arg8[%c0_11, %c0_12], %12 {strides = array<i32>} : memref<512x128xf32, #tpu.memory_space<vmem>>, vector<512x128xf32>,
    } else {
    }
    %c0 = arith.constant 0 : index
    %c0_1 = arith.constant 0 : index
    %3 = vector.load %arg8[%c0, %c0_1] : memref<512x128xf32, #tpu.memory_space<vmem>>, vector<512x128xf32>
    %c0_2 = arith.constant 0 : index
    %c0_3 = arith.constant 0 : index
    %4 = vector.load %arg3[%c0_2, %c0_3] : memref<512x128xbf16, #tpu.memory_space<vmem>>, vector<512x128xbf16>
    %c0_4 = arith.constant 0 : index
    %c0_5 = arith.constant 0 : index
    %5 = vector.load %arg4[%c0_4, %c0_5] : memref<128x128xbf16, #tpu.memory_space<vmem>>, vector<128x128xbf16>
    %cst = arith.constant dense<0.000000e+00> : vector<512x128xf32>
    %6 = tpu.matmul %4, %5, %cst {dimension_numbers = #tpu.dot_dimension_numbers<[1], [0], [0], [1], [0, 0, 1, 1], [], []>} : vector<512x128xbf16>, vector<128x128xbf16>, vector<512x128xf32> -> vector<512x128xf32>
    %7 = arith.addf %3, %6 : vector<512x128xf32>
    %c0_6 = arith.constant 0 : index
    %c0_7 = arith.constant 0 : index
    %8 = vector.load %arg8[%c0_6, %c0_7] : memref<512x128xf32, #tpu.memory_space<vmem>>, vector<512x128xf32>
    tpu.vector_store %arg8[%c0_6, %c0_7], %7 {strides = array<i32>} : memref<512x128xf32, #tpu.memory_space<vmem>>, vector<512x128xf32>,
    %c0_i32_8 = arith.constant 0 : i32
    %9 = arith.cmpi eq, %arg2, %c0_i32_8 : i32
    %10 = arith.extui %9 : i1 to i32
    %c0_i32_9 = arith.constant 0 : i32
    %11 = arith.cmpi ne, %10, %c0_i32_9 : i32
    scf.if %11 {
      %c0_10 = arith.constant 0 : index
      %c0_11 = arith.constant 0 : index
      %12 = vector.load %arg8[%c0_10, %c0_11] : memref<512x128xf32, #tpu.memory_space<vmem>>, vector<512x128xf32>
      %c0_12 = arith.constant 0 : index
      %c0_13 = arith.constant 0 : index
      %13 = vector.load %arg5[%c0_12, %c0_13] : memref<1x128xf32, #tpu.memory_space<vmem>>, vector<1x128xf32>
      %14 = vector.broadcast %13 : vector<1x128xf32> to vector<512x128xf32>
      %15 = arith.mulf %12, %14 : vector<512x128xf32>
      %c0_14 = arith.constant 0 : index
      %c0_15 = arith.constant 0 : index
      %16 = vector.load %arg6[%c0_14, %c0_15] : memref<1x128xf32, #tpu.memory_space<vmem>>, vector<1x128xf32>
      %17 = vector.broadcast %16 : vector<1x128xf32> to vector<512x128xf32>
      %18 = arith.addf %15, %17 : vector<512x128xf32>
      %cst_16 = arith.constant 0.000000e+00 : f32
      %19 = vector.broadcast %cst_16 : f32 to vector<512x128xf32>
      %20 = arith.cmpf ogt, %18, %19 : vector<512x128xf32>
      %cst_17 = arith.constant 1.000000e-01 : f32
      %21 = vector.broadcast %cst_17 : f32 to vector<512x128xf32>
      %22 = arith.mulf %21, %18 : vector<512x128xf32>
      %23 = arith.select %20, %18, %22 : vector<512x128xi1>, vector<512x128xf32>
      %c0_18 = arith.constant 0 : index
      %c0_19 = arith.constant 0 : index
      %24 = vector.load %arg7[%c0_18, %c0_19] : memref<512x128xf32, #tpu.memory_space<vmem>>, vector<512x128xf32>
      tpu.vector_store %arg7[%c0_18, %c0_19], %23 {strides = array<i32>} : memref<512x128xf32, #tpu.memory_space<vmem>>, vector<512x128xf32>,
    } else {
    }
    return
  }
  func.func @transform_0(%arg0: i32, %arg1: i32, %arg2: i32) -> (i32, i32) {
    %c0_i32 = arith.constant 0 : i32
    return %arg0, %arg2 : i32, i32
  }
  func.func @transform_1(%arg0: i32, %arg1: i32, %arg2: i32) -> (i32, i32) {
    %c0_i32 = arith.constant 0 : i32
    return %arg2, %arg1 : i32, i32
  }
  func.func @transform_2(%arg0: i32, %arg1: i32, %arg2: i32) -> (i32, i32) {
    %c0_i32 = arith.constant 0 : i32
    %c0_i32_0 = arith.constant 0 : i32
    return %c0_i32, %arg1 : i32, i32
  }
  func.func @transform_3(%arg0: i32, %arg1: i32, %arg2: i32) -> (i32, i32) {
    %c0_i32 = arith.constant 0 : i32
    %c0_i32_0 = arith.constant 0 : i32
    return %c0_i32, %arg1 : i32, i32
  }
  func.func @transform_4(%arg0: i32, %arg1: i32, %arg2: i32) -> (i32, i32) {
    %c0_i32 = arith.constant 0 : i32
    return %arg0, %arg1 : i32, i32
  }
}

</mosaic_0001>

<bundles_post_ra>
// kernel: tpu_custom_call.1
= control target key start
LH: loop header
LB: loop body
LE: loop exit
PB: predicated region body
PF: predicated region fallthrough
CT: control target
= control target key end

     0   :  { %s2659_s0 = inlined_call_operand.hbm [shape: bf16[8192,128], index: 0, kind: input, shape index: {}]   ;;  %s2660_s1 = inlined_call_operand.hbm [shape: bf16[128,128], index: 1, kind: input, shape index: {}]   ;;  %s2661_s2 = inlined_call_operand.hbm [shape: f32[1,128], index: 2, kind: input, shape index: {}]   ;;  %s2662_s3 = inlined_call_operand.hbm [shape: f32[1,128], index: 3, kind: input, shape index: {}]   ;;  %s2663_s4 = inlined_call_operand.hbm [shape: f32[8192,128], index: 4, kind: output, shape index: {}]  }
   0x1   :  { %2666 = sst [smem:[#allocation16_spill]] %s2660_s1 }
   0x2   :  { %2667 = sst [smem:[#allocation17_spill]] %s2661_s2 }
   0x3   :  { %9 = vsyncpa [#allocation4], 0 }
   0x4   :  { %11 = vsyncpa [#allocation4 + $0x1], 0 }
   0x5   :  { %12 = vsyncpa [#allocation7], 0 }
   0x6   :  { %13 = vsyncpa [#allocation10], 0 }
   0x7   :  { %14 = vsyncpa [#allocation5], 0 }
   0x8   :  { %16 = vsyncpa [#allocation5 + $0x1], 0  ;;  %s2252_s15 = smov 0   ;;  %s2254_s16 = smov 0  }
   0x9   :  { %s2256_s17 = smov 0   ;;  %s2258_s18 = smov 0  }
   0xa   :  { %s2260_s19 = smov 0   ;;  %s2262_s20 = smov 0  }
   0xb LB: > { %s1662_s21 = sadd.s32 4294967295, %s2218_s20   ;;  %s1663_s22 = sadd.s32 4294967294, %s2218_s20   ;;  %s2218_s20 = sphi %s2262_s20, %s22_s20   ;;  %s2214_s19 = sphi %s2260_s19, %s2684_s19   ;;  %s2210_s18 = sphi %s2258_s18, %s2683_s18   ;;  %s2206_s17 = sphi %s2256_s17, %s2682_s17   ;;  %s2202_s16 = sphi %s2254_s16, %s2681_s16   ;;  %s2198_s15 = sphi %s2252_s15, %s2680_s15  }
   0xc   : > { %p63_p0 = scmp.ne.s32.totalorder %s2202_s16, %s2198_s15  ;;  %p2286_p1 = scmp.eq.s32.totalorder %s1662_s21, 0 }
   0xd   : > { %p2290_p2 = scmp.eq.s32.totalorder %s1662_s21, 15  ;;  %p175_p3 = scmp.eq.s32.totalorder %s1663_s22, 15 }
   0xe   : > { %p2296_p4 = por %p2286_p1, %p63_p0  ;;  %p1664_p5 = scmp.ge.s32.totalorder %s2218_s20, 1 }
   0xf   : > { %p2301_p6 = por %p175_p3, %p63_p0  ;;  %p182_p7 = scmp.lt.s32.totalorder %s2218_s20, 17 }
  0x10   : > { %s2672_s1 = sld [smem:[#allocation16_spill]]  ;;  %s2220_s5 = smov [#allocation6]  }
  0x11   : > { %p2309_p8 = pnand %p1664_p5, %p182_p7  ;;  %s199_s6 = sshll.u32 %s2220_s5, 4  ;;  %s200_s6 = int_to_ptr.vmem [resolvable:$true] %s199_s6 }
  0x12   : > { %s2675_s2 = sld [smem:[#allocation17_spill]]  ;;  %s2664_s11 = smov 64  }
  0x13   : > { %p1925_p9 = pneg %p2309_p8  ;;  %s2665_s12 = smov 4  }
  0x14   : > { %s2223_s13 = smov [#allocation8]   ;;  %s226_s27 = sshll.u32 %s2662_s3, 4  ;;  %s227_s27 = int_to_ptr.hbm [resolvable:$true] %s226_s27 }
  0x15   : > { %p2317_p10 = pnand %p1925_p9, %p2286_p1  ;;  %s215_s14 = sshll.u32 %s2223_s13, 4  ;;  %s216_s14 = int_to_ptr.vmem [resolvable:$true] %s215_s14 }
  0x16   : > { %s197_s29 = sshll.u32 %s2672_s1, 4  ;;  %s2224_s28 = smov [#allocation9]   ;;  %s198_s29 = int_to_ptr.hbm [resolvable:$true] %s197_s29 }
  0x17   : > { %1928 = dma.hbm_to_vmem [thread:$0]  (!%p2317_p10), %s198_s29, 1024, %s200_s6, [#allocation7], %s2664_s11, %s2664_s11, %s2665_s12  }
  0x18   : > { %s213_s10 = sshll.u32 %s2675_s2, 4  ;;  %s228_s5 = sshll.u32 %s2224_s28, 4  ;;  %s214_s10 = int_to_ptr.hbm [resolvable:$true] %s213_s10  ;;  %s229_s5 = int_to_ptr.vmem [resolvable:$true] %s228_s5 }
  0x19   : > { %1931 = dma.hbm_to_vmem [thread:$0]  (!%p2317_p10), %s214_s10, 16, %s216_s14, [#allocation7]  }
  0x1a   : > { %1934 = dma.hbm_to_vmem [thread:$0]  (!%p2317_p10), %s227_s27, 16, %s229_s5, [#allocation10]  }
  0x1b   : > { %s41_s29 = sadd.s32 1, %s2214_s19  ;;  %s50_s6 = sadd.s32 1, %s2206_s17 }
  0x1c   : > { %p43_p11 = scmp.ge.s32.totalorder %s41_s29, 16  ;;  %p57_p12 = scmp.ne.s32.totalorder %s2206_s17, %s2202_s16 }
  0x1d   : > { %p58_p13 = scmp.eq.s32.totalorder %s2218_s20, 0  ;;  %p1946_p5 = scmp.lt.s32.totalorder %s2218_s20, 16 }
  0x1e   : > { %s2686_s29 = smov (%p43_p11, %s41_s29), 0  ;;  %p2349_p3 = por %p2290_p2, %p57_p12 }
  0x1f   : > { %p2343_p0 = por %p58_p13, %p57_p12  ;;  %s45_s7 = ssub.s32 %s2214_s19, %s2686_s29 }
  0x20   : > { %p48_p7 = scmp.eq.s32.totalorder %s45_s7, 0  ;;  %s239_s10 = sand.u32 1, %s2206_s17  }
  0x21   : > { %s1669_s13 = sshll.u32 %s239_s10, 8  ;;  %s1843_s21 = sshll.u32 %s2214_s19, 8 }
  0x22   : > { %s2358_s14 = scalar_select %p48_p7, %s2206_s17, %s50_s6  }
  0x23   : > { %s249_s28 = scalar_lea.hbm %s2659_s0, %s1843_s21  ;;  %s243_s5 = scalar_lea.vmem [#allocation3], %s1669_s13 }
  0x24   : > { %s252_s11 = sshll.u32 %s243_s5, 4  ;;  %s250_s24 = sshll.u32 %s249_s28, 4  ;;  %s253_s11 = int_to_ptr.vmem [resolvable:$true] %s252_s11  ;;  %s251_s24 = int_to_ptr.hbm [resolvable:$true] %s250_s24 }
  0x25   : > { %p1936_p2 = pnand %p1946_p5, %p2343_p0  ;;  %s240_s12 = scalar_lea.sflag [#allocation4], %s239_s10 }
  0x26   : > { %s2678_s1 = smov 4   ;;  %s2679_s2 = smov 64  }
  0x27   : > { %1938 = dma.hbm_to_vmem [thread:$0]  (!%p1936_p2), %s251_s24, 4096, %s253_s11, %s240_s12, %s2679_s2, %s2679_s2, %s2678_s1  }
  0x28   : > { %264 = sbr.rel (%p2309_p8) target bundleno = 347 (0x15b), region = 36  ;;  %s2372_s6 = sand.u32 (!%p2309_p8), 1, %s2202_s16  }
  0x29   : > { %s1673_s7 = sshll.u32 (!%p2309_p8), %s2372_s6, 8  ;;  %s267_s13 = scalar_lea.sflag (!%p2309_p8), [#allocation4], %s2372_s6 }
  0x2a   : > { %s2376_s21 = scalar_lea.vmem (!%p2309_p8), [#allocation3], %s1673_s7 }
  0x2d   : > { %2181 = dma.done.wait (%p2296_p4), %s267_s13, 4096  }
  0x2e   : > { %2183 = vsyncadd (%p2296_p4), %s267_s13, 4294963200 }
  0x2f   : > { %2185 = dma.done.wait (%p2286_p1), [#allocation7], 1040  }
  0x30   : > { %2187 = vsyncadd (%p2286_p1), [#allocation7], 4294966256 }
  0x31   : > { %2189 = dma.done.wait (%p2286_p1), [#allocation10], 16  }
  0x32   : > { %2191 = vsyncadd (%p2286_p1), [#allocation10], 4294967280  ;;  %v1883_v0 = vld [vmem:[#allocation6 + $0x38] sm:$0xff]  ;;  %v1882_v1 = vld [vmem:[#allocation6 + $0x30] sm:$0xff]  ;;  %s1677_s1 = sshll.u32 %s2372_s6, 9  ;;  %s1884_s23 = sshll.u32 %s2210_s18, 9 }
  0x33   : > { %766 = vmatpush.bf16.msra.mxu0 %v1883_v0  ;;  %1885 = vmatpush.bf16.msra.mxu1 %v1883_v0  ;;  %v1881_v2 = vld [vmem:[#allocation6 + $0x28] sm:$0xff]  ;;  %v1880_v3 = vld [vmem:[#allocation6 + $0x20] sm:$0xff]  ;;  %v1879_v4 = vld [vmem:[#allocation6 + $0x18] sm:$0xff]  ;;  %s2431_s2 = scalar_lea.vmem [#allocation11], %s1677_s1  ;;  %s1535_s30 = scalar_lea.hbm %s2663_s4, %s1884_s23 }
  0x34   : > { %1886 = vmatpush.bf16.msra.mxu2 %v1883_v0  ;;  %1887 = vmatpush.bf16.msra.mxu3 %v1883_v0  ;;  %v1878_v5 = vld [vmem:[#allocation6 + $0x10] sm:$0xff]  ;;  %v1877_v6 = vld [vmem:[#allocation6 + $0x8] sm:$0xff]  ;;  %v1876_v7 = vld [vmem:[#allocation6] sm:$0xff]  ;;  %s1536_s11 = sshll.u32 %s2431_s2, 4  ;;  %s1538_s12 = sshll.u32 %s1535_s30, 4  ;;  %s1537_s11 = int_to_ptr.vmem [resolvable:$true] %s1536_s11  ;;  %s1539_s12 = int_to_ptr.hbm [resolvable:$true] %s1538_s12 }
  0x35   : > { %v1844_v8 = vld [vmem:[%s2376_s21] sm:$0xff]  ;;  %v1845_v12 = vld [vmem:[%s2376_s21 + $0x8] sm:$0xff]  ;;  %v1846_v16 = vld [vmem:[%s2376_s21 + $0x10] sm:$0xff]  ;;  %s1523_s8 = scalar_lea.sflag [#allocation5], %s2372_s6  ;;  %s2142_s10 = sshra.s32 %s1539_s12, 4  ;;  %s2143_s10 = int_to_ptr.hbm [resolvable:$true] %s2142_s10 }
  0x36   : > { %v1852_v9 = vld [vmem:[%s2376_s21 + $0x40] sm:$0xff]  ;;  %v1853_v13 = vld [vmem:[%s2376_s21 + $0x48] sm:$0xff]  ;;  %v1854_v17 = vld [vmem:[%s2376_s21 + $0x50] sm:$0xff]  ;;  %s2144_s22 = scalar_lea.hbm %s2143_s10, 512  ;;  %s2148_s5 = scalar_lea.hbm %s2663_s4, 8192 }
  0x37   : > { %767 = vmatpush.bf16.msra.mxu0 %v1882_v1  ;;  %1888 = vmatpush.bf16.msra.mxu1 %v1882_v1  ;;  %v1860_v10 = vld [vmem:[%s2376_s21 + $0x80] sm:$0xff]  ;;  %v1861_v14 = vld [vmem:[%s2376_s21 + $0x88] sm:$0xff]  ;;  %v1862_v18 = vld [vmem:[%s2376_s21 + $0x90] sm:$0xff]  ;;  %p2145_p1 = scmp.ne.s32.totalorder %s2143_s10, %s2144_s22  ;;  %p2149_p9 = scmp.lt.s32.totalorder %s2143_s10, %s2663_s4 }
  0x38   : > { %1889 = vmatpush.bf16.msra.mxu2 %v1882_v1  ;;  %1890 = vmatpush.bf16.msra.mxu3 %v1882_v1  ;;  %v1868_v11 = vld [vmem:[%s2376_s21 + $0xc0] sm:$0xff]  ;;  %v1869_v15 = vld [vmem:[%s2376_s21 + $0xc8] sm:$0xff]  ;;  %v1870_v19 = vld [vmem:[%s2376_s21 + $0xd0] sm:$0xff]  ;;  %p2150_p10 = scmp.lt.s32.totalorder %s2148_s5, %s2144_s22 }
  0x39   : > { %v1847_v20 = vld [vmem:[%s2376_s21 + $0x18] sm:$0xff]  ;;  %v1848_v24 = vld [vmem:[%s2376_s21 + $0x20] sm:$0xff]  ;;  %v1849_v28 = vld [vmem:[%s2376_s21 + $0x28] sm:$0xff]  ;;  %p2146_p4 = pnand %p2145_p1, %p2349_p3 }
  0x3a   : > { %v1855_v21 = vld [vmem:[%s2376_s21 + $0x58] sm:$0xff]  ;;  %v1856_v25 = vld [vmem:[%s2376_s21 + $0x60] sm:$0xff]  ;;  %v1857_v29 = vld [vmem:[%s2376_s21 + $0x68] sm:$0xff]  ;;  %p2151_p11 = por %p2150_p10, %p2149_p9 }
  0x3b   : > { %768 = vmatpush.bf16.msra.mxu0 %v1881_v2  ;;  %1891 = vmatpush.bf16.msra.mxu1 %v1881_v2  ;;  %v1863_v22 = vld [vmem:[%s2376_s21 + $0x98] sm:$0xff]  ;;  %v1864_v26 = vld [vmem:[%s2376_s21 + $0xa0] sm:$0xff]  ;;  %v1865_v30 = vld [vmem:[%s2376_s21 + $0xa8] sm:$0xff]  ;;  %p2147_p8 = pneg %p2146_p4 }
  0x3c   : > { %1892 = vmatpush.bf16.msra.mxu2 %v1881_v2  ;;  %1893 = vmatpush.bf16.msra.mxu3 %v1881_v2  ;;  %v1871_v23 = vld [vmem:[%s2376_s21 + $0xd8] sm:$0xff]  ;;  %v1872_v27 = vld [vmem:[%s2376_s21 + $0xe0] sm:$0xff]  ;;  %v1873_v31 = vld [vmem:[%s2376_s21 + $0xe8] sm:$0xff] }
  0x3d   : > { %v1850_v32 = vld [vmem:[%s2376_s21 + $0x30] sm:$0xff]  ;;  %v1851_v36 = vld [vmem:[%s2376_s21 + $0x38] sm:$0xff]  ;;  %v2422_v40 = vld [vmem:[#allocation8] ss:$0 sm:$0xff]  ;;  %p2152_p12 = pnand %p2151_p11, %p2147_p8 }
  0x3e   : > { %v1858_v33 = vld [vmem:[%s2376_s21 + $0x70] sm:$0xff]  ;;  %v1859_v37 = vld [vmem:[%s2376_s21 + $0x78] sm:$0xff]  ;;  %v2424_v41 = vld [vmem:[#allocation9] ss:$0 sm:$0xff] }
  0x3f   : > { %769 = vmatpush.bf16.msra.mxu0 %v1880_v3  ;;  %1894 = vmatpush.bf16.msra.mxu1 %v1880_v3  ;;  %v1866_v34 = vld [vmem:[%s2376_s21 + $0xb0] sm:$0xff]  ;;  %v1867_v38 = vld [vmem:[%s2376_s21 + $0xb8] sm:$0xff] }
  0x40   : > { %1895 = vmatpush.bf16.msra.mxu2 %v1880_v3  ;;  %1896 = vmatpush.bf16.msra.mxu3 %v1880_v3  ;;  %v1874_v35 = vld [vmem:[%s2376_s21 + $0xf0] sm:$0xff]  ;;  %v1875_v39 = vld [vmem:[%s2376_s21 + $0xf8] sm:$0xff] }
  0x43   : > { %770 = vmatpush.bf16.msra.mxu0 %v1879_v4  ;;  %1897 = vmatpush.bf16.msra.mxu1 %v1879_v4 }
  0x44   : > { %1898 = vmatpush.bf16.msra.mxu2 %v1879_v4  ;;  %1899 = vmatpush.bf16.msra.mxu3 %v1879_v4 }
  0x47   : > { %771 = vmatpush.bf16.msra.mxu0 %v1878_v5  ;;  %1900 = vmatpush.bf16.msra.mxu1 %v1878_v5 }
  0x48   : > { %1901 = vmatpush.bf16.msra.mxu2 %v1878_v5  ;;  %1902 = vmatpush.bf16.msra.mxu3 %v1878_v5 }
  0x4b   : > { %772 = vmatpush.bf16.msra.mxu0 %v1877_v6  ;;  %1903 = vmatpush.bf16.msra.mxu1 %v1877_v6 }
  0x4c   : > { %1904 = vmatpush.bf16.msra.mxu2 %v1877_v6  ;;  %1905 = vmatpush.bf16.msra.mxu3 %v1877_v6 }
  0x4f   : > { %773 = vmatpush.bf16.msra.mxu0 %v1876_v7  ;;  %1906 = vmatpush.bf16.msra.mxu1 %v1876_v7 }
  0x50   : > { %1907 = vmatpush.bf16.msra.mxu2 %v1876_v7  ;;  %1908 = vmatpush.bf16.msra.mxu3 %v1876_v7 }
  0x52   : > { %774 = vmatmul.bf16.vlgmr.msra.gmra.mxu0 %v1844_v8  ;;  %814 = vmatmul.bf16.vlgmr.msra.gmra.mxu1 %v1852_v9 }
  0x53   : > { %854 = vmatmul.bf16.vlgmr.msra.gmra.mxu2 %v1860_v10  ;;  %894 = vmatmul.bf16.vlgmr.msra.gmra.mxu3 %v1868_v11 }
  0x62   : > { %779 = vmatmul.bf16.gmra.mxu0 %v1845_v12  ;;  %819 = vmatmul.bf16.gmra.mxu1 %v1853_v13 }
  0x63   : > { %859 = vmatmul.bf16.gmra.mxu2 %v1861_v14  ;;  %899 = vmatmul.bf16.gmra.mxu3 %v1869_v15 }
  0x72   : > { %784 = vmatmul.bf16.gmra.mxu0 %v1846_v16  ;;  %824 = vmatmul.bf16.gmra.mxu1 %v1854_v17 }
  0x73   : > { %864 = vmatmul.bf16.gmra.mxu2 %v1862_v18  ;;  %904 = vmatmul.bf16.gmra.mxu3 %v1870_v19 }
  0x82   : > { %789 = vmatmul.bf16.gmra.mxu0 %v1847_v20  ;;  %829 = vmatmul.bf16.gmra.mxu1 %v1855_v21 }
  0x83   : > { %869 = vmatmul.bf16.gmra.mxu2 %v1863_v22  ;;  %909 = vmatmul.bf16.gmra.mxu3 %v1871_v23 }
  0x92   : > { %794 = vmatmul.bf16.gmra.mxu0 %v1848_v24  ;;  %834 = vmatmul.bf16.gmra.mxu1 %v1856_v25 }
  0x93   : > { %874 = vmatmul.bf16.gmra.mxu2 %v1864_v26  ;;  %914 = vmatmul.bf16.gmra.mxu3 %v1872_v27 }
  0xa2   : > { %799 = vmatmul.bf16.gmra.mxu0 %v1849_v28  ;;  %839 = vmatmul.bf16.gmra.mxu1 %v1857_v29 }
  0xa3   : > { %879 = vmatmul.bf16.gmra.mxu2 %v1865_v30  ;;  %919 = vmatmul.bf16.gmra.mxu3 %v1873_v31 }
  0xb2   : > { %804 = vmatmul.bf16.gmra.mxu0 %v1850_v32  ;;  %844 = vmatmul.bf16.gmra.mxu1 %v1858_v33 }
  0xb3   : > { %884 = vmatmul.bf16.gmra.mxu2 %v1866_v34  ;;  %924 = vmatmul.bf16.gmra.mxu3 %v1874_v35 }
  0xc2   : > { %809 = vmatmul.bf16.gmra.mxu0 %v1851_v36  ;;  %849 = vmatmul.bf16.gmra.mxu1 %v1859_v37 }
  0xc3   : > { %889 = vmatmul.bf16.gmra.mxu2 %v1867_v38  ;;  %929 = vmatmul.bf16.gmra.mxu3 %v1875_v39 }
  0xcf   : > { %v775_v42 = vpop.f32.mrf.mxu0  ;;  %v815_v43 = vpop.f32.mrf.mxu1 }
  0xd0   : > { %v1134_v44 = vmul.f32 %v2422_v40, %v775_v42  ;;  %v1150_v45 = vmul.f32 %v2422_v40, %v815_v43 }
  0xd2   : > { %v1202_v46 = vadd.f32 %v2424_v41, %v1134_v44  ;;  %v1218_v47 = vadd.f32 %v2424_v41, %v1150_v45 }
  0xd4   : > { %vm1266_vm0 = vcmp.gt.f32.partialorder %v1202_v46, 0.0  ;;  %v1330_v48 = vmul.f32 0.1, %v1202_v46  ;;  %vm1282_vm1 = vcmp.gt.f32.partialorder %v1218_v47, 0.0  ;;  %v1346_v49 = vmul.f32 0.1, %v1218_v47 }
  0xd6   : > { %v1394_v50 = vsel %vm1266_vm0, %v1202_v46, %v1330_v48  ;;  %v1410_v51 = vsel %vm1282_vm1, %v1218_v47, %v1346_v49  ;;  %v855_v52 = vpop.f32.mrf.mxu2  ;;  %v895_v53 = vpop.f32.mrf.mxu3 }
  0xd7   : > { %1458 = vst [vmem:[%s2431_s2] sm:$0xff] %v1394_v50  ;;  %v1166_v54 = vmul.f32 %v2422_v40, %v855_v52  ;;  %v1182_v55 = vmul.f32 %v2422_v40, %v895_v53  ;;  %v777_v56 = vpop.f32.mrf.mxu0  ;;  %v817_v57 = vpop.f32.mrf.mxu1 }
  0xd8   : > { %1474 = vst [vmem:[%s2431_s2 + $0x80] sm:$0xff] %v1410_v51  ;;  %v1135_v58 = vmul.f32 %v2422_v40, %v777_v56  ;;  %v1151_v59 = vmul.f32 %v2422_v40, %v817_v57 }
  0xd9   : > { %v1234_v60 = vadd.f32 %v2424_v41, %v1166_v54  ;;  %v1250_v61 = vadd.f32 %v2424_v41, %v1182_v55 }
  0xda   : > { %v1203_v62 = vadd.f32 %v2424_v41, %v1135_v58  ;;  %v1219_v63 = vadd.f32 %v2424_v41, %v1151_v59 }
  0xdb   : > { %vm1298_vm2 = vcmp.gt.f32.partialorder %v1234_v60, 0.0  ;;  %v1362_v0 = vmul.f32 0.1, %v1234_v60  ;;  %vm1314_vm3 = vcmp.gt.f32.partialorder %v1250_v61, 0.0  ;;  %v1378_v1 = vmul.f32 0.1, %v1250_v61 }
  0xdc   : > { %vm1267_vm4 = vcmp.gt.f32.partialorder %v1203_v62, 0.0  ;;  %v1331_v2 = vmul.f32 0.1, %v1203_v62  ;;  %vm1283_vm5 = vcmp.gt.f32.partialorder %v1219_v63, 0.0  ;;  %v1347_v3 = vmul.f32 0.1, %v1219_v63 }
  0xdd   : > { %v1426_v4 = vsel %vm1298_vm2, %v1234_v60, %v1362_v0  ;;  %v1442_v5 = vsel %vm1314_vm3, %v1250_v61, %v1378_v1 }
  0xde   : > { %1490 = vst [vmem:[%s2431_s2 + $0x100] sm:$0xff] %v1426_v4  ;;  %v1395_v6 = vsel %vm1267_vm4, %v1203_v62, %v1331_v2  ;;  %v1411_v7 = vsel %vm1283_vm5, %v1219_v63, %v1347_v3  ;;  %v857_v8 = vpop.f32.mrf.mxu2  ;;  %v897_v9 = vpop.f32.mrf.mxu3 }
  0xdf   : > { %1506 = vst [vmem:[%s2431_s2 + $0x180] sm:$0xff] %v1442_v5  ;;  %v1167_v10 = vmul.f32 %v2422_v40, %v857_v8  ;;  %v1183_v11 = vmul.f32 %v2422_v40, %v897_v9  ;;  %v780_v12 = vpop.f32.mrf.mxu0  ;;  %v820_v13 = vpop.f32.mrf.mxu1 }
  0xe0   : > { %1459 = vst [vmem:[%s2431_s2 + $0x8] sm:$0xff] %v1395_v6  ;;  %v1136_v14 = vmul.f32 %v2422_v40, %v780_v12  ;;  %v1152_v15 = vmul.f32 %v2422_v40, %v820_v13 }
  0xe1   : > { %1475 = vst [vmem:[%s2431_s2 + $0x88] sm:$0xff] %v1411_v7  ;;  %v1235_v16 = vadd.f32 %v2424_v41, %v1167_v10  ;;  %v1251_v17 = vadd.f32 %v2424_v41, %v1183_v11 }
  0xe2   : > { %v1204_v18 = vadd.f32 %v2424_v41, %v1136_v14  ;;  %v1220_v19 = vadd.f32 %v2424_v41, %v1152_v15 }
  0xe3   : > { %vm1299_vm6 = vcmp.gt.f32.partialorder %v1235_v16, 0.0  ;;  %v1363_v20 = vmul.f32 0.1, %v1235_v16  ;;  %vm1315_vm7 = vcmp.gt.f32.partialorder %v1251_v17, 0.0  ;;  %v1379_v21 = vmul.f32 0.1, %v1251_v17 }
  0xe4   : > { %vm1268_vm8 = vcmp.gt.f32.partialorder %v1204_v18, 0.0  ;;  %v1332_v22 = vmul.f32 0.1, %v1204_v18  ;;  %vm1284_vm9 = vcmp.gt.f32.partialorder %v1220_v19, 0.0  ;;  %v1348_v23 = vmul.f32 0.1, %v1220_v19 }
  0xe5   : > { %v1427_v24 = vsel %vm1299_vm6, %v1235_v16, %v1363_v20  ;;  %v1443_v25 = vsel %vm1315_vm7, %v1251_v17, %v1379_v21 }
  0xe6   : > { %1491 = vst [vmem:[%s2431_s2 + $0x108] sm:$0xff] %v1427_v24  ;;  %v1396_v26 = vsel %vm1268_vm8, %v1204_v18, %v1332_v22  ;;  %v1412_v27 = vsel %vm1284_vm9, %v1220_v19, %v1348_v23  ;;  %v860_v28 = vpop.f32.mrf.mxu2  ;;  %v900_v29 = vpop.f32.mrf.mxu3 }
  0xe7   : > { %1507 = vst [vmem:[%s2431_s2 + $0x188] sm:$0xff] %v1443_v25  ;;  %v1168_v30 = vmul.f32 %v2422_v40, %v860_v28  ;;  %v1184_v31 = vmul.f32 %v2422_v40, %v900_v29  ;;  %v782_v32 = vpop.f32.mrf.mxu0  ;;  %v822_v33 = vpop.f32.mrf.mxu1 }
  0xe8   : > { %1460 = vst [vmem:[%s2431_s2 + $0x10] sm:$0xff] %v1396_v26  ;;  %v1137_v34 = vmul.f32 %v2422_v40, %v782_v32  ;;  %v1153_v35 = vmul.f32 %v2422_v40, %v822_v33 }
  0xe9   : > { %1476 = vst [vmem:[%s2431_s2 + $0x90] sm:$0xff] %v1412_v27  ;;  %v1236_v36 = vadd.f32 %v2424_v41, %v1168_v30  ;;  %v1252_v37 = vadd.f32 %v2424_v41, %v1184_v31 }
  0xea   : > { %v1205_v38 = vadd.f32 %v2424_v41, %v1137_v34  ;;  %v1221_v39 = vadd.f32 %v2424_v41, %v1153_v35 }
  0xeb   : > { %vm1300_vm10 = vcmp.gt.f32.partialorder %v1236_v36, 0.0  ;;  %v1364_v42 = vmul.f32 0.1, %v1236_v36  ;;  %vm1316_vm11 = vcmp.gt.f32.partialorder %v1252_v37, 0.0  ;;  %v1380_v43 = vmul.f32 0.1, %v1252_v37 }
  0xec   : > { %vm1269_vm12 = vcmp.gt.f32.partialorder %v1205_v38, 0.0  ;;  %v1333_v44 = vmul.f32 0.1, %v1205_v38  ;;  %vm1285_vm13 = vcmp.gt.f32.partialorder %v1221_v39, 0.0  ;;  %v1349_v45 = vmul.f32 0.1, %v1221_v39 }
  0xed   : > { %v1428_v46 = vsel %vm1300_vm10, %v1236_v36, %v1364_v42  ;;  %v1444_v47 = vsel %vm1316_vm11, %v1252_v37, %v1380_v43 }
  0xee   : > { %1492 = vst [vmem:[%s2431_s2 + $0x110] sm:$0xff] %v1428_v46  ;;  %v1397_v48 = vsel %vm1269_vm12, %v1205_v38, %v1333_v44  ;;  %v1413_v49 = vsel %vm1285_vm13, %v1221_v39, %v1349_v45  ;;  %v862_v50 = vpop.f32.mrf.mxu2  ;;  %v902_v51 = vpop.f32.mrf.mxu3 }
  0xef   : > { %1508 = vst [vmem:[%s2431_s2 + $0x190] sm:$0xff] %v1444_v47  ;;  %v1169_v52 = vmul.f32 %v2422_v40, %v862_v50  ;;  %v1185_v53 = vmul.f32 %v2422_v40, %v902_v51  ;;  %v785_v54 = vpop.f32.mrf.mxu0  ;;  %v825_v55 = vpop.f32.mrf.mxu1 }
  0xf0   : > { %1461 = vst [vmem:[%s2431_s2 + $0x18] sm:$0xff] %v1397_v48  ;;  %v1138_v56 = vmul.f32 %v2422_v40, %v785_v54  ;;  %v1154_v57 = vmul.f32 %v2422_v40, %v825_v55 }
  0xf1   : > { %1477 = vst [vmem:[%s2431_s2 + $0x98] sm:$0xff] %v1413_v49  ;;  %v1237_v58 = vadd.f32 %v2424_v41, %v1169_v52  ;;  %v1253_v59 = vadd.f32 %v2424_v41, %v1185_v53 }
  0xf2   : > { %v1206_v60 = vadd.f32 %v2424_v41, %v1138_v56  ;;  %v1222_v61 = vadd.f32 %v2424_v41, %v1154_v57 }
  0xf3   : > { %vm1301_vm14 = vcmp.gt.f32.partialorder %v1237_v58, 0.0  ;;  %v1365_v62 = vmul.f32 0.1, %v1237_v58  ;;  %vm1317_vm15 = vcmp.gt.f32.partialorder %v1253_v59, 0.0  ;;  %v1381_v63 = vmul.f32 0.1, %v1253_v59 }
  0xf4   : > { %vm1270_vm0 = vcmp.gt.f32.partialorder %v1206_v60, 0.0  ;;  %v1334_v0 = vmul.f32 0.1, %v1206_v60  ;;  %vm1286_vm1 = vcmp.gt.f32.partialorder %v1222_v61, 0.0  ;;  %v1350_v1 = vmul.f32 0.1, %v1222_v61 }
  0xf5   : > { %v1429_v2 = vsel %vm1301_vm14, %v1237_v58, %v1365_v62  ;;  %v1445_v3 = vsel %vm1317_vm15, %v1253_v59, %v1381_v63 }
  0xf6   : > { %1493 = vst [vmem:[%s2431_s2 + $0x118] sm:$0xff] %v1429_v2  ;;  %v1398_v4 = vsel %vm1270_vm0, %v1206_v60, %v1334_v0  ;;  %v1414_v5 = vsel %vm1286_vm1, %v1222_v61, %v1350_v1  ;;  %v865_v6 = vpop.f32.mrf.mxu2  ;;  %v905_v7 = vpop.f32.mrf.mxu3 }
  0xf7   : > { %1509 = vst [vmem:[%s2431_s2 + $0x198] sm:$0xff] %v1445_v3  ;;  %v1170_v8 = vmul.f32 %v2422_v40, %v865_v6  ;;  %v1186_v9 = vmul.f32 %v2422_v40, %v905_v7  ;;  %v787_v10 = vpop.f32.mrf.mxu0  ;;  %v827_v11 = vpop.f32.mrf.mxu1 }
  0xf8   : > { %1462 = vst [vmem:[%s2431_s2 + $0x20] sm:$0xff] %v1398_v4  ;;  %v1139_v12 = vmul.f32 %v2422_v40, %v787_v10  ;;  %v1155_v13 = vmul.f32 %v2422_v40, %v827_v11 }
  0xf9   : > { %1478 = vst [vmem:[%s2431_s2 + $0xa0] sm:$0xff] %v1414_v5  ;;  %v1238_v14 = vadd.f32 %v2424_v41, %v1170_v8  ;;  %v1254_v15 = vadd.f32 %v2424_v41, %v1186_v9 }
  0xfa   : > { %v1207_v16 = vadd.f32 %v2424_v41, %v1139_v12  ;;  %v1223_v17 = vadd.f32 %v2424_v41, %v1155_v13 }
  0xfb   : > { %vm1302_vm2 = vcmp.gt.f32.partialorder %v1238_v14, 0.0  ;;  %v1366_v18 = vmul.f32 0.1, %v1238_v14  ;;  %vm1318_vm3 = vcmp.gt.f32.partialorder %v1254_v15, 0.0  ;;  %v1382_v19 = vmul.f32 0.1, %v1254_v15 }
  0xfc   : > { %vm1271_vm4 = vcmp.gt.f32.partialorder %v1207_v16, 0.0  ;;  %v1335_v20 = vmul.f32 0.1, %v1207_v16  ;;  %vm1287_vm5 = vcmp.gt.f32.partialorder %v1223_v17, 0.0  ;;  %v1351_v21 = vmul.f32 0.1, %v1223_v17 }
  0xfd   : > { %v1430_v22 = vsel %vm1302_vm2, %v1238_v14, %v1366_v18  ;;  %v1446_v23 = vsel %vm1318_vm3, %v1254_v15, %v1382_v19 }
  0xfe   : > { %1494 = vst [vmem:[%s2431_s2 + $0x120] sm:$0xff] %v1430_v22  ;;  %v1399_v24 = vsel %vm1271_vm4, %v1207_v16, %v1335_v20  ;;  %v1415_v25 = vsel %vm1287_vm5, %v1223_v17, %v1351_v21  ;;  %v867_v26 = vpop.f32.mrf.mxu2  ;;  %v907_v27 = vpop.f32.mrf.mxu3 }
  0xff   : > { %1510 = vst [vmem:[%s2431_s2 + $0x1a0] sm:$0xff] %v1446_v23  ;;  %v1171_v28 = vmul.f32 %v2422_v40, %v867_v26  ;;  %v1187_v29 = vmul.f32 %v2422_v40, %v907_v27  ;;  %v790_v30 = vpop.f32.mrf.mxu0  ;;  %v830_v31 = vpop.f32.mrf.mxu1 }
 0x100   : > { %1463 = vst [vmem:[%s2431_s2 + $0x28] sm:$0xff] %v1399_v24  ;;  %v1140_v32 = vmul.f32 %v2422_v40, %v790_v30  ;;  %v1156_v33 = vmul.f32 %v2422_v40, %v830_v31 }
 0x101   : > { %1479 = vst [vmem:[%s2431_s2 + $0xa8] sm:$0xff] %v1415_v25  ;;  %v1239_v34 = vadd.f32 %v2424_v41, %v1171_v28  ;;  %v1255_v35 = vadd.f32 %v2424_v41, %v1187_v29 }
 0x102   : > { %v1208_v36 = vadd.f32 %v2424_v41, %v1140_v32  ;;  %v1224_v37 = vadd.f32 %v2424_v41, %v1156_v33 }
 0x103   : > { %vm1303_vm6 = vcmp.gt.f32.partialorder %v1239_v34, 0.0  ;;  %v1367_v38 = vmul.f32 0.1, %v1239_v34  ;;  %vm1319_vm7 = vcmp.gt.f32.partialorder %v1255_v35, 0.0  ;;  %v1383_v39 = vmul.f32 0.1, %v1255_v35 }
 0x104   : > { %vm1272_vm8 = vcmp.gt.f32.partialorder %v1208_v36, 0.0  ;;  %v1336_v42 = vmul.f32 0.1, %v1208_v36  ;;  %vm1288_vm9 = vcmp.gt.f32.partialorder %v1224_v37, 0.0  ;;  %v1352_v43 = vmul.f32 0.1, %v1224_v37 }
 0x105   : > { %v1431_v44 = vsel %vm1303_vm6, %v1239_v34, %v1367_v38  ;;  %v1447_v45 = vsel %vm1319_vm7, %v1255_v35, %v1383_v39 }
 0x106   : > { %1495 = vst [vmem:[%s2431_s2 + $0x128] sm:$0xff] %v1431_v44  ;;  %v1400_v46 = vsel %vm1272_vm8, %v1208_v36, %v1336_v42  ;;  %v1416_v47 = vsel %vm1288_vm9, %v1224_v37, %v1352_v43  ;;  %v870_v48 = vpop.f32.mrf.mxu2  ;;  %v910_v49 = vpop.f32.mrf.mxu3 }
 0x107   : > { %1511 = vst [vmem:[%s2431_s2 + $0x1a8] sm:$0xff] %v1447_v45  ;;  %v1172_v50 = vmul.f32 %v2422_v40, %v870_v48  ;;  %v1188_v51 = vmul.f32 %v2422_v40, %v910_v49  ;;  %v792_v52 = vpop.f32.mrf.mxu0  ;;  %v832_v53 = vpop.f32.mrf.mxu1 }
 0x108   : > { %1464 = vst [vmem:[%s2431_s2 + $0x30] sm:$0xff] %v1400_v46  ;;  %v1141_v54 = vmul.f32 %v2422_v40, %v792_v52  ;;  %v1157_v55 = vmul.f32 %v2422_v40, %v832_v53 }
 0x109   : > { %1480 = vst [vmem:[%s2431_s2 + $0xb0] sm:$0xff] %v1416_v47  ;;  %v1240_v56 = vadd.f32 %v2424_v41, %v1172_v50  ;;  %v1256_v57 = vadd.f32 %v2424_v41, %v1188_v51 }
 0x10a   : > { %v1209_v58 = vadd.f32 %v2424_v41, %v1141_v54  ;;  %v1225_v59 = vadd.f32 %v2424_v41, %v1157_v55 }
 0x10b   : > { %vm1304_vm10 = vcmp.gt.f32.partialorder %v1240_v56, 0.0  ;;  %v1368_v60 = vmul.f32 0.1, %v1240_v56  ;;  %vm1320_vm11 = vcmp.gt.f32.partialorder %v1256_v57, 0.0  ;;  %v1384_v61 = vmul.f32 0.1, %v1256_v57 }
 0x10c   : > { %vm1273_vm12 = vcmp.gt.f32.partialorder %v1209_v58, 0.0  ;;  %v1337_v62 = vmul.f32 0.1, %v1209_v58  ;;  %vm1289_vm13 = vcmp.gt.f32.partialorder %v1225_v59, 0.0  ;;  %v1353_v63 = vmul.f32 0.1, %v1225_v59 }
 0x10d   : > { %v1432_v0 = vsel %vm1304_vm10, %v1240_v56, %v1368_v60  ;;  %v1448_v1 = vsel %vm1320_vm11, %v1256_v57, %v1384_v61 }
 0x10e   : > { %1496 = vst [vmem:[%s2431_s2 + $0x130] sm:$0xff] %v1432_v0  ;;  %v1401_v2 = vsel %vm1273_vm12, %v1209_v58, %v1337_v62  ;;  %v1417_v3 = vsel %vm1289_vm13, %v1225_v59, %v1353_v63  ;;  %v872_v4 = vpop.f32.mrf.mxu2  ;;  %v912_v5 = vpop.f32.mrf.mxu3 }
 0x10f   : > { %1512 = vst [vmem:[%s2431_s2 + $0x1b0] sm:$0xff] %v1448_v1  ;;  %v1173_v6 = vmul.f32 %v2422_v40, %v872_v4  ;;  %v1189_v7 = vmul.f32 %v2422_v40, %v912_v5  ;;  %v795_v8 = vpop.f32.mrf.mxu0  ;;  %v835_v9 = vpop.f32.mrf.mxu1 }
 0x110   : > { %1465 = vst [vmem:[%s2431_s2 + $0x38] sm:$0xff] %v1401_v2  ;;  %v1142_v10 = vmul.f32 %v2422_v40, %v795_v8  ;;  %v1158_v11 = vmul.f32 %v2422_v40, %v835_v9 }
 0x111   : > { %1481 = vst [vmem:[%s2431_s2 + $0xb8] sm:$0xff] %v1417_v3  ;;  %v1241_v12 = vadd.f32 %v2424_v41, %v1173_v6  ;;  %v1257_v13 = vadd.f32 %v2424_v41, %v1189_v7 }
 0x112   : > { %v1210_v14 = vadd.f32 %v2424_v41, %v1142_v10  ;;  %v1226_v15 = vadd.f32 %v2424_v41, %v1158_v11 }
 0x113   : > { %vm1305_vm14 = vcmp.gt.f32.partialorder %v1241_v12, 0.0  ;;  %v1369_v16 = vmul.f32 0.1, %v1241_v12  ;;  %vm1321_vm15 = vcmp.gt.f32.partialorder %v1257_v13, 0.0  ;;  %v1385_v17 = vmul.f32 0.1, %v1257_v13 }
 0x114   : > { %vm1274_vm0 = vcmp.gt.f32.partialorder %v1210_v14, 0.0  ;;  %v1338_v18 = vmul.f32 0.1, %v1210_v14  ;;  %vm1290_vm1 = vcmp.gt.f32.partialorder %v1226_v15, 0.0  ;;  %v1354_v19 = vmul.f32 0.1, %v1226_v15 }
 0x115   : > { %v1433_v20 = vsel %vm1305_vm14, %v1241_v12, %v1369_v16  ;;  %v1449_v21 = vsel %vm1321_vm15, %v1257_v13, %v1385_v17 }
 0x116   : > { %1497 = vst [vmem:[%s2431_s2 + $0x138] sm:$0xff] %v1433_v20  ;;  %v1402_v22 = vsel %vm1274_vm0, %v1210_v14, %v1338_v18  ;;  %v1418_v23 = vsel %vm1290_vm1, %v1226_v15, %v1354_v19  ;;  %v875_v24 = vpop.f32.mrf.mxu2  ;;  %v915_v25 = vpop.f32.mrf.mxu3 }
 0x117   : > { %1513 = vst [vmem:[%s2431_s2 + $0x1b8] sm:$0xff] %v1449_v21  ;;  %v1174_v26 = vmul.f32 %v2422_v40, %v875_v24  ;;  %v1190_v27 = vmul.f32 %v2422_v40, %v915_v25  ;;  %v797_v28 = vpop.f32.mrf.mxu0  ;;  %v837_v29 = vpop.f32.mrf.mxu1 }
 0x118   : > { %1466 = vst [vmem:[%s2431_s2 + $0x40] sm:$0xff] %v1402_v22  ;;  %v1143_v30 = vmul.f32 %v2422_v40, %v797_v28  ;;  %v1159_v31 = vmul.f32 %v2422_v40, %v837_v29 }
 0x119   : > { %1482 = vst [vmem:[%s2431_s2 + $0xc0] sm:$0xff] %v1418_v23  ;;  %v1242_v32 = vadd.f32 %v2424_v41, %v1174_v26  ;;  %v1258_v33 = vadd.f32 %v2424_v41, %v1190_v27 }
 0x11a   : > { %v1211_v34 = vadd.f32 %v2424_v41, %v1143_v30  ;;  %v1227_v35 = vadd.f32 %v2424_v41, %v1159_v31 }
 0x11b   : > { %vm1306_vm2 = vcmp.gt.f32.partialorder %v1242_v32, 0.0  ;;  %v1370_v36 = vmul.f32 0.1, %v1242_v32  ;;  %vm1322_vm3 = vcmp.gt.f32.partialorder %v1258_v33, 0.0  ;;  %v1386_v37 = vmul.f32 0.1, %v1258_v33 }
 0x11c   : > { %vm1275_vm4 = vcmp.gt.f32.partialorder %v1211_v34, 0.0  ;;  %v1339_v38 = vmul.f32 0.1, %v1211_v34  ;;  %vm1291_vm5 = vcmp.gt.f32.partialorder %v1227_v35, 0.0  ;;  %v1355_v39 = vmul.f32 0.1, %v1227_v35 }
 0x11d   : > { %v1434_v42 = vsel %vm1306_vm2, %v1242_v32, %v1370_v36  ;;  %v1450_v43 = vsel %vm1322_vm3, %v1258_v33, %v1386_v37 }
 0x11e   : > { %1498 = vst [vmem:[%s2431_s2 + $0x140] sm:$0xff] %v1434_v42  ;;  %v1403_v44 = vsel %vm1275_vm4, %v1211_v34, %v1339_v38  ;;  %v1419_v45 = vsel %vm1291_vm5, %v1227_v35, %v1355_v39  ;;  %v877_v46 = vpop.f32.mrf.mxu2  ;;  %v917_v47 = vpop.f32.mrf.mxu3 }
 0x11f   : > { %1514 = vst [vmem:[%s2431_s2 + $0x1c0] sm:$0xff] %v1450_v43  ;;  %v1175_v48 = vmul.f32 %v2422_v40, %v877_v46  ;;  %v1191_v49 = vmul.f32 %v2422_v40, %v917_v47  ;;  %v800_v50 = vpop.f32.mrf.mxu0  ;;  %v840_v51 = vpop.f32.mrf.mxu1 }
 0x120   : > { %1467 = vst [vmem:[%s2431_s2 + $0x48] sm:$0xff] %v1403_v44  ;;  %v1144_v52 = vmul.f32 %v2422_v40, %v800_v50  ;;  %v1160_v53 = vmul.f32 %v2422_v40, %v840_v51 }
 0x121   : > { %1483 = vst [vmem:[%s2431_s2 + $0xc8] sm:$0xff] %v1419_v45  ;;  %v1243_v54 = vadd.f32 %v2424_v41, %v1175_v48  ;;  %v1259_v55 = vadd.f32 %v2424_v41, %v1191_v49 }
 0x122   : > { %v1212_v56 = vadd.f32 %v2424_v41, %v1144_v52  ;;  %v1228_v57 = vadd.f32 %v2424_v41, %v1160_v53 }
 0x123   : > { %vm1307_vm6 = vcmp.gt.f32.partialorder %v1243_v54, 0.0  ;;  %v1371_v58 = vmul.f32 0.1, %v1243_v54  ;;  %vm1323_vm7 = vcmp.gt.f32.partialorder %v1259_v55, 0.0  ;;  %v1387_v59 = vmul.f32 0.1, %v1259_v55 }
 0x124   : > { %vm1276_vm8 = vcmp.gt.f32.partialorder %v1212_v56, 0.0  ;;  %v1340_v60 = vmul.f32 0.1, %v1212_v56  ;;  %vm1292_vm9 = vcmp.gt.f32.partialorder %v1228_v57, 0.0  ;;  %v1356_v61 = vmul.f32 0.1, %v1228_v57 }
 0x125   : > { %v1435_v62 = vsel %vm1307_vm6, %v1243_v54, %v1371_v58  ;;  %v1451_v63 = vsel %vm1323_vm7, %v1259_v55, %v1387_v59 }
 0x126   : > { %1499 = vst [vmem:[%s2431_s2 + $0x148] sm:$0xff] %v1435_v62  ;;  %v1404_v0 = vsel %vm1276_vm8, %v1212_v56, %v1340_v60  ;;  %v1420_v1 = vsel %vm1292_vm9, %v1228_v57, %v1356_v61  ;;  %v880_v2 = vpop.f32.mrf.mxu2  ;;  %v920_v3 = vpop.f32.mrf.mxu3 }
 0x127   : > { %1515 = vst [vmem:[%s2431_s2 + $0x1c8] sm:$0xff] %v1451_v63  ;;  %v1176_v4 = vmul.f32 %v2422_v40, %v880_v2  ;;  %v1192_v5 = vmul.f32 %v2422_v40, %v920_v3  ;;  %v802_v6 = vpop.f32.mrf.mxu0  ;;  %v842_v7 = vpop.f32.mrf.mxu1 }
 0x128   : > { %1468 = vst [vmem:[%s2431_s2 + $0x50] sm:$0xff] %v1404_v0  ;;  %v1145_v8 = vmul.f32 %v2422_v40, %v802_v6  ;;  %v1161_v9 = vmul.f32 %v2422_v40, %v842_v7 }
 0x129   : > { %1484 = vst [vmem:[%s2431_s2 + $0xd0] sm:$0xff] %v1420_v1  ;;  %v1244_v10 = vadd.f32 %v2424_v41, %v1176_v4  ;;  %v1260_v11 = vadd.f32 %v2424_v41, %v1192_v5 }
 0x12a   : > { %v1213_v12 = vadd.f32 %v2424_v41, %v1145_v8  ;;  %v1229_v13 = vadd.f32 %v2424_v41, %v1161_v9 }
 0x12b   : > { %vm1308_vm10 = vcmp.gt.f32.partialorder %v1244_v10, 0.0  ;;  %v1372_v14 = vmul.f32 0.1, %v1244_v10  ;;  %vm1324_vm11 = vcmp.gt.f32.partialorder %v1260_v11, 0.0  ;;  %v1388_v15 = vmul.f32 0.1, %v1260_v11 }
 0x12c   : > { %vm1277_vm12 = vcmp.gt.f32.partialorder %v1213_v12, 0.0  ;;  %v1341_v16 = vmul.f32 0.1, %v1213_v12  ;;  %vm1293_vm13 = vcmp.gt.f32.partialorder %v1229_v13, 0.0  ;;  %v1357_v17 = vmul.f32 0.1, %v1229_v13 }
 0x12d   : > { %v1436_v18 = vsel %vm1308_vm10, %v1244_v10, %v1372_v14  ;;  %v1452_v19 = vsel %vm1324_vm11, %v1260_v11, %v1388_v15 }
 0x12e   : > { %1500 = vst [vmem:[%s2431_s2 + $0x150] sm:$0xff] %v1436_v18  ;;  %v1405_v20 = vsel %vm1277_vm12, %v1213_v12, %v1341_v16  ;;  %v1421_v21 = vsel %vm1293_vm13, %v1229_v13, %v1357_v17  ;;  %v882_v22 = vpop.f32.mrf.mxu2  ;;  %v922_v23 = vpop.f32.mrf.mxu3 }
 0x12f   : > { %1516 = vst [vmem:[%s2431_s2 + $0x1d0] sm:$0xff] %v1452_v19  ;;  %v1177_v24 = vmul.f32 %v2422_v40, %v882_v22  ;;  %v1193_v25 = vmul.f32 %v2422_v40, %v922_v23  ;;  %v805_v26 = vpop.f32.mrf.mxu0  ;;  %v845_v27 = vpop.f32.mrf.mxu1 }
 0x130   : > { %1469 = vst [vmem:[%s2431_s2 + $0x58] sm:$0xff] %v1405_v20  ;;  %v1146_v28 = vmul.f32 %v2422_v40, %v805_v26  ;;  %v1162_v29 = vmul.f32 %v2422_v40, %v845_v27 }
 0x131   : > { %1485 = vst [vmem:[%s2431_s2 + $0xd8] sm:$0xff] %v1421_v21  ;;  %v1245_v30 = vadd.f32 %v2424_v41, %v1177_v24  ;;  %v1261_v31 = vadd.f32 %v2424_v41, %v1193_v25 }
 0x132   : > { %v1214_v32 = vadd.f32 %v2424_v41, %v1146_v28  ;;  %v1230_v33 = vadd.f32 %v2424_v41, %v1162_v29 }
 0x133   : > { %vm1309_vm14 = vcmp.gt.f32.partialorder %v1245_v30, 0.0  ;;  %v1373_v34 = vmul.f32 0.1, %v1245_v30  ;;  %vm1325_vm15 = vcmp.gt.f32.partialorder %v1261_v31, 0.0  ;;  %v1389_v35 = vmul.f32 0.1, %v1261_v31 }
 0x134   : > { %vm1278_vm0 = vcmp.gt.f32.partialorder %v1214_v32, 0.0  ;;  %v1342_v36 = vmul.f32 0.1, %v1214_v32  ;;  %vm1294_vm1 = vcmp.gt.f32.partialorder %v1230_v33, 0.0  ;;  %v1358_v37 = vmul.f32 0.1, %v1230_v33 }
 0x135   : > { %v1437_v38 = vsel %vm1309_vm14, %v1245_v30, %v1373_v34  ;;  %v1453_v39 = vsel %vm1325_vm15, %v1261_v31, %v1389_v35 }
 0x136   : > { %1501 = vst [vmem:[%s2431_s2 + $0x158] sm:$0xff] %v1437_v38  ;;  %v1406_v42 = vsel %vm1278_vm0, %v1214_v32, %v1342_v36  ;;  %v1422_v43 = vsel %vm1294_vm1, %v1230_v33, %v1358_v37  ;;  %v885_v44 = vpop.f32.mrf.mxu2  ;;  %v925_v45 = vpop.f32.mrf.mxu3 }
 0x137   : > { %1517 = vst [vmem:[%s2431_s2 + $0x1d8] sm:$0xff] %v1453_v39  ;;  %v1178_v46 = vmul.f32 %v2422_v40, %v885_v44  ;;  %v1194_v47 = vmul.f32 %v2422_v40, %v925_v45  ;;  %v807_v48 = vpop.f32.mrf.mxu0  ;;  %v847_v49 = vpop.f32.mrf.mxu1 }
 0x138   : > { %1470 = vst [vmem:[%s2431_s2 + $0x60] sm:$0xff] %v1406_v42  ;;  %v1147_v50 = vmul.f32 %v2422_v40, %v807_v48  ;;  %v1163_v51 = vmul.f32 %v2422_v40, %v847_v49 }
 0x139   : > { %1486 = vst [vmem:[%s2431_s2 + $0xe0] sm:$0xff] %v1422_v43  ;;  %v1246_v52 = vadd.f32 %v2424_v41, %v1178_v46  ;;  %v1262_v53 = vadd.f32 %v2424_v41, %v1194_v47 }
 0x13a   : > { %v1215_v54 = vadd.f32 %v2424_v41, %v1147_v50  ;;  %v1231_v55 = vadd.f32 %v2424_v41, %v1163_v51 }
 0x13b   : > { %vm1310_vm2 = vcmp.gt.f32.partialorder %v1246_v52, 0.0  ;;  %v1374_v56 = vmul.f32 0.1, %v1246_v52  ;;  %vm1326_vm3 = vcmp.gt.f32.partialorder %v1262_v53, 0.0  ;;  %v1390_v57 = vmul.f32 0.1, %v1262_v53 }
 0x13c   : > { %vm1279_vm4 = vcmp.gt.f32.partialorder %v1215_v54, 0.0  ;;  %v1343_v58 = vmul.f32 0.1, %v1215_v54  ;;  %vm1295_vm5 = vcmp.gt.f32.partialorder %v1231_v55, 0.0  ;;  %v1359_v59 = vmul.f32 0.1, %v1231_v55 }
 0x13d   : > { %v1438_v60 = vsel %vm1310_vm2, %v1246_v52, %v1374_v56  ;;  %v1454_v61 = vsel %vm1326_vm3, %v1262_v53, %v1390_v57 }
 0x13e   : > { %1502 = vst [vmem:[%s2431_s2 + $0x160] sm:$0xff] %v1438_v60  ;;  %v1407_v62 = vsel %vm1279_vm4, %v1215_v54, %v1343_v58  ;;  %v1423_v63 = vsel %vm1295_vm5, %v1231_v55, %v1359_v59  ;;  %v887_v0 = vpop.f32.mrf.mxu2  ;;  %v927_v1 = vpop.f32.mrf.mxu3 }
 0x13f   : > { %1518 = vst [vmem:[%s2431_s2 + $0x1e0] sm:$0xff] %v1454_v61  ;;  %v1179_v2 = vmul.f32 %v2422_v40, %v887_v0  ;;  %v1195_v3 = vmul.f32 %v2422_v40, %v927_v1  ;;  %v810_v4 = vpop.f32.mrf.mxu0  ;;  %v850_v5 = vpop.f32.mrf.mxu1 }
 0x140   : > { %1471 = vst [vmem:[%s2431_s2 + $0x68] sm:$0xff] %v1407_v62  ;;  %v1148_v6 = vmul.f32 %v2422_v40, %v810_v4  ;;  %v1164_v7 = vmul.f32 %v2422_v40, %v850_v5 }
 0x141   : > { %1487 = vst [vmem:[%s2431_s2 + $0xe8] sm:$0xff] %v1423_v63  ;;  %v1247_v8 = vadd.f32 %v2424_v41, %v1179_v2  ;;  %v1263_v9 = vadd.f32 %v2424_v41, %v1195_v3 }
 0x142   : > { %v1216_v10 = vadd.f32 %v2424_v41, %v1148_v6  ;;  %v1232_v11 = vadd.f32 %v2424_v41, %v1164_v7 }
 0x143   : > { %vm1311_vm6 = vcmp.gt.f32.partialorder %v1247_v8, 0.0  ;;  %v1375_v12 = vmul.f32 0.1, %v1247_v8  ;;  %vm1327_vm7 = vcmp.gt.f32.partialorder %v1263_v9, 0.0  ;;  %v1391_v13 = vmul.f32 0.1, %v1263_v9 }
 0x144   : > { %vm1280_vm8 = vcmp.gt.f32.partialorder %v1216_v10, 0.0  ;;  %v1344_v14 = vmul.f32 0.1, %v1216_v10  ;;  %vm1296_vm9 = vcmp.gt.f32.partialorder %v1232_v11, 0.0  ;;  %v1360_v15 = vmul.f32 0.1, %v1232_v11 }
 0x145   : > { %v1439_v16 = vsel %vm1311_vm6, %v1247_v8, %v1375_v12  ;;  %v1455_v17 = vsel %vm1327_vm7, %v1263_v9, %v1391_v13 }
 0x146   : > { %1503 = vst [vmem:[%s2431_s2 + $0x168] sm:$0xff] %v1439_v16  ;;  %v1408_v18 = vsel %vm1280_vm8, %v1216_v10, %v1344_v14  ;;  %v1424_v19 = vsel %vm1296_vm9, %v1232_v11, %v1360_v15  ;;  %v890_v20 = vpop.f32.mrf.mxu2  ;;  %v930_v21 = vpop.f32.mrf.mxu3 }
 0x147   : > { %1519 = vst [vmem:[%s2431_s2 + $0x1e8] sm:$0xff] %v1455_v17  ;;  %v1180_v22 = vmul.f32 %v2422_v40, %v890_v20  ;;  %v1196_v23 = vmul.f32 %v2422_v40, %v930_v21  ;;  %v812_v24 = vpop.f32.mrf.mxu0  ;;  %v852_v25 = vpop.f32.mrf.mxu1 }
 0x148   : > { %1472 = vst [vmem:[%s2431_s2 + $0x70] sm:$0xff] %v1408_v18  ;;  %v1149_v26 = vmul.f32 %v2422_v40, %v812_v24  ;;  %v1165_v27 = vmul.f32 %v2422_v40, %v852_v25 }
 0x149   : > { %1488 = vst [vmem:[%s2431_s2 + $0xf0] sm:$0xff] %v1424_v19  ;;  %v1248_v28 = vadd.f32 %v2424_v41, %v1180_v22  ;;  %v1264_v29 = vadd.f32 %v2424_v41, %v1196_v23 }
 0x14a   : > { %v1217_v30 = vadd.f32 %v2424_v41, %v1149_v26  ;;  %v1233_v31 = vadd.f32 %v2424_v41, %v1165_v27 }
 0x14b   : > { %vm1312_vm10 = vcmp.gt.f32.partialorder %v1248_v28, 0.0  ;;  %v1376_v32 = vmul.f32 0.1, %v1248_v28  ;;  %vm1328_vm11 = vcmp.gt.f32.partialorder %v1264_v29, 0.0  ;;  %v1392_v33 = vmul.f32 0.1, %v1264_v29 }
 0x14c   : > { %vm1281_vm12 = vcmp.gt.f32.partialorder %v1217_v30, 0.0  ;;  %v1345_v34 = vmul.f32 0.1, %v1217_v30  ;;  %vm1297_vm13 = vcmp.gt.f32.partialorder %v1233_v31, 0.0  ;;  %v1361_v35 = vmul.f32 0.1, %v1233_v31 }
 0x14d   : > { %v1440_v36 = vsel %vm1312_vm10, %v1248_v28, %v1376_v32  ;;  %v1456_v37 = vsel %vm1328_vm11, %v1264_v29, %v1392_v33 }
 0x14e   : > { %1504 = vst [vmem:[%s2431_s2 + $0x170] sm:$0xff] %v1440_v36  ;;  %v1409_v38 = vsel %vm1281_vm12, %v1217_v30, %v1345_v34  ;;  %v1425_v39 = vsel %vm1297_vm13, %v1233_v31, %v1361_v35  ;;  %v892_v42 = vpop.f32.mrf.mxu2  ;;  %v932_v43 = vpop.f32.mrf.mxu3 }
 0x14f   : > { %1520 = vst [vmem:[%s2431_s2 + $0x1f0] sm:$0xff] %v1456_v37  ;;  %v1181_v44 = vmul.f32 %v2422_v40, %v892_v42  ;;  %v1197_v45 = vmul.f32 %v2422_v40, %v932_v43 }
 0x150   : > { %1473 = vst [vmem:[%s2431_s2 + $0x78] sm:$0xff] %v1409_v38 }
 0x151   : > { %1489 = vst [vmem:[%s2431_s2 + $0xf8] sm:$0xff] %v1425_v39  ;;  %v1249_v46 = vadd.f32 %v2424_v41, %v1181_v44  ;;  %v1265_v47 = vadd.f32 %v2424_v41, %v1197_v45 }
 0x153   : > { %vm1313_vm14 = vcmp.gt.f32.partialorder %v1249_v46, 0.0  ;;  %v1377_v48 = vmul.f32 0.1, %v1249_v46  ;;  %vm1329_vm15 = vcmp.gt.f32.partialorder %v1265_v47, 0.0  ;;  %v1393_v40 = vmul.f32 0.1, %v1265_v47 }
 0x155   : > { %v1441_v49 = vsel %vm1313_vm14, %v1249_v46, %v1377_v48  ;;  %v1457_v50 = vsel %vm1329_vm15, %v1265_v47, %v1393_v40 }
 0x156   : > { %1505 = vst [vmem:[%s2431_s2 + $0x178] sm:$0xff] %v1441_v49 }
 0x157   : > { %1521 = vst [vmem:[%s2431_s2 + $0x1f8] sm:$0xff] %v1457_v50 }
 0x158   : > { %2155 = shalt.err (!%p2152_p12)
}
 0x159   : > { %s2225_s6 = smov 128   ;;  %s2226_s13 = smov 8  }
 0x15a   : > { %1923 = dma.vmem_to_hbm [thread:$0]  (%p2349_p3), %s1537_s11, 8192, %s1539_s12, %s1523_s8, %s2225_s6, %s2225_s6, %s2226_s13  }
 0x15b PF: > { %p1950_p13 = scmp.ge.s32.totalorder %s2218_s20, 2  ;;  %s1553_s21 = sand.u32 1, %s2198_s15  }
 0x15c   : > { %s1554_s1 = scalar_lea.sflag [#allocation5], %s1553_s21 }
 0x15d   : > { %p1940_p0 = pnand %p1950_p13, %p2301_p6 }
 0x15f   : > { %p1941_p5 = pneg %p1940_p0 }
 0x161   : > { %2193 = dma.done.wait (%p1941_p5), %s1554_s1, 8192  }
 0x162   : > { %2195 = vsyncadd (%p1941_p5), %s1554_s1, 4294959104  ;;  %s22_s20 = sadd.s32 1, %s2218_s20   ;;  %s2680_s15 = smov %s2202_s16 }
 0x163   : > { %p19_p7 = scmp.ge.s32.totalorder %s22_s20, 18   ;;  %s2681_s16 = smov %s2206_s17 }
 0x164   : > { %s2682_s17 = smov %s2358_s14  ;;  %s2683_s18 = smov %s2214_s19 }
 0x165   : > { %s2684_s19 = smov %s2686_s29  ;;  %21 = sbr.rel (!%p19_p7) target bundleno = 11 (0xb), region = 104 }
 0x16a   :  { %1560 = vsyncpa [#allocation4], 1 }
 0x16b   :  { %1562 = vsyncpa [#allocation4 + $0x1], 1 }
 0x16c   :  { %1563 = vsyncpa [#allocation7], 1 }
 0x16d   :  { %1564 = vsyncpa [#allocation10], 1 }
 0x16e   :  { %1565 = vsyncpa [#allocation5], 1 }
 0x16f   :  { %1567 = vsyncpa [#allocation5 + $0x1], 1 }

</bundles_post_ra>
